<compile_context>
chip_gen: v6e
topology: v6e:2x2x1
jax: 0.10.0
libtpu: 0.0.40
codegen_flags: <defaults>
</compile_context>

<pallas_src>
import jax
import jax.numpy as jnp
from jax.experimental import pallas as pl
from jax.experimental.pallas import tpu as pltpu


def _ce_kernel(logits_ref, tgt_ref, loss_ref):
    # logits_ref: (1, C, TH, PW)  input dtype
    # tgt_ref:    (1, TH, PW)     int32
    # loss_ref:   (1, TH, PW)     input dtype
    x = logits_ref[0].astype(jnp.float32)                    # (C, TH, PW), f32 compute
    num_classes = x.shape[0]
    tgt = tgt_ref[0]                                         # (TH, PW) int32

    # Class reductions over the LEADING axis -> elementwise VPU ops per class slab.
    m = jnp.max(x, axis=0)                                   # (TH, PW)
    xs = x - m[None]                                         # shifted logits
    s = jnp.sum(jnp.exp(xs), axis=0)                         # softmax denominator (EUP + VPU)

    cls = jax.lax.broadcasted_iota(jnp.int32, x.shape, 0)    # (C, TH, PW)
    picked = jnp.sum(jnp.where(cls == tgt[None], xs, 0.0), axis=0)   # x_t - m

    loss = jnp.log(s) - picked                               # logsumexp(x) - x_t

    # ignore_index=-100 (and any out-of-range target) -> loss 0, like torch.
    valid = jnp.logical_and(tgt >= 0, tgt < num_classes)
    loss_ref[0] = jnp.where(valid, loss, 0.0).astype(loss_ref.dtype)


def _pixel_view(H, W, C, itemsize):
    """Choose a lane-dense (PH, PW) view of the H*W pixel axis."""
    P = H * W
    if P % 128 != 0:
        # Fallback: keep (H, W); W equals the full array dim so any W is legal.
        return H, W
    pw = 128
    # Grow PW for wide unmasked stores, but keep the minimal logits block
    # (C, 8, PW) under ~4 MiB so double-buffering stays well inside VMEM.
    budget = 4 * 1024 * 1024
    while (P % (pw * 2) == 0 and pw * 2 <= 2048
           and C * 8 * (pw * 2) * itemsize <= budget):
        pw *= 2
    return P // pw, pw


def _row_tile(PH, PW, C, itemsize):
    """Pick TH so the logits block is ~4 MiB (cap 8 MiB), multiple of 8 or full."""
    row_bytes = max(C * PW * itemsize, 1)
    target = (4 * 1024 * 1024) // row_bytes
    cap = (8 * 1024 * 1024) // row_bytes
    th = max(1, min(target, cap))
    th = max(8, (th // 8) * 8)
    if th >= PH:
        return PH
    return th


def cross_entropy_2d(logits_nchw, targets_nhw):
    """Per-pixel cross-entropy (reduction='none', weight=None, ignore_index=-100).

    logits_nchw: (N, C, H, W) float
    targets_nhw: (N, H, W) int
    returns:     (N, H, W) in logits dtype
    """
    N, C, H, W = logits_nchw.shape
    itemsize = jnp.dtype(logits_nchw.dtype).itemsize
    PH, PW = _pixel_view(H, W, C, itemsize)

    # Free reshapes (contiguous); NO transpose.
    logits = logits_nchw.reshape(N, C, PH, PW)
    targets = targets_nhw.reshape(N, PH, PW).astype(jnp.int32)

    TH = _row_tile(PH, PW, C, itemsize)
    grid = (N, pl.cdiv(PH, TH))

    loss = pl.pallas_call(
        _ce_kernel,
        out_shape=jax.ShapeDtypeStruct((N, PH, PW), logits_nchw.dtype),
        grid_spec=pltpu.PrefetchScalarGridSpec(
            num_scalar_prefetch=0,
            grid=grid,
            in_specs=[
                pl.BlockSpec((1, C, TH, PW), lambda n, h: (n, 0, h, 0)),
                pl.BlockSpec((1, TH, PW), lambda n, h: (n, h, 0)),
            ],
            out_specs=pl.BlockSpec((1, TH, PW), lambda n, h: (n, h, 0)),
        ),
        compiler_params=pltpu.CompilerParams(
            dimension_semantics=("parallel", "parallel"),
            # Above the 16/32 MiB scoped defaults (v5e/v6e/v7x), below v7x's
            # 64 MiB physical; blocks are capped at 8 MiB so double-buffering fits.
            vmem_limit_bytes=48 * 1024 * 1024,
        ),
    )(logits, targets)

    return loss.reshape(N, H, W)


def _reference(logits, targets):
    """Pure-JAX reference (same math as torch.nn.CrossEntropyLoss, reduction='none')."""
    C = logits.shape[1]
    logp = jax.nn.log_softmax(logits.astype(jnp.float32), axis=1)      # (N, C, H, W)
    tgt_safe = jnp.clip(targets, 0, C - 1)
    ref = -jnp.take_along_axis(logp, tgt_safe[:, None, :, :], axis=1)[:, 0]   # (N, H, W)
    return jnp.where(jnp.logical_and(targets >= 0, targets < C), ref, 0.0)


if __name__ == "__main__":
    # CrossEntropy2D(weight=None, reduction='none') has no learnable parameters.
    key = jax.random.PRNGKey(0)

    # Case 1: lane-dense path (H*W divisible by 128).
    N, C, H, W = 2, 4, 16, 16
    k_logits, k_tgt, k2_logits, k2_tgt = jax.random.split(key, 4)
    logits = jax.random.normal(k_logits, (N, C, H, W), dtype=jnp.float32)
    targets = jax.random.randint(k_tgt, (N, H, W), 0, C, dtype=jnp.int32)
    # Exercise torch's default ignore_index=-100 on a few pixels.
    targets = targets.at[0, 0, :3].set(-100)

    loss = jax.block_until_ready(cross_entropy_2d(logits, targets))
    ref = _reference(logits, targets)
    assert loss.shape == (N, H, W)
    assert loss.dtype == logits.dtype
    assert jnp.allclose(loss.astype(jnp.float32), ref, atol=1e-5, rtol=1e-5)

    # Case 2: fallback path (H*W not divisible by 128).
    N2, C2, H2, W2 = 1, 3, 8, 20
    logits2 = jax.random.normal(k2_logits, (N2, C2, H2, W2), dtype=jnp.float32)
    targets2 = jax.random.randint(k2_tgt, (N2, H2, W2), 0, C2, dtype=jnp.int32)
    targets2 = targets2.at[0, 1, :2].set(-100)

    loss2 = jax.block_until_ready(cross_entropy_2d(logits2, targets2))
    ref2 = _reference(logits2, targets2)
    assert loss2.shape == (N2, H2, W2)
    assert jnp.allclose(loss2.astype(jnp.float32), ref2, atol=1e-5, rtol=1e-5)

    print("KERNEL_OK")
</pallas_src>

<mosaic_0001>
module attributes {stable_mosaic.version = 11 : i64} {
  func.func @_ce_kernel(%arg0: i32, %arg1: i32, %arg2: memref<1x4x1x256xf32, #tpu.memory_space<vmem>>, %arg3: memref<1x1x256xi32, #tpu.memory_space<vmem>>, %arg4: memref<1x1x256xf32, #tpu.memory_space<vmem>>) attributes {dimension_semantics = [#tpu.dimension_semantics<parallel>, #tpu.dimension_semantics<parallel>], iteration_bounds = array<i64: 2, 1>, scalar_prefetch = 0 : i64, scratch_operands = 0 : i64, tpu.core_type = #tpu.core_type<tc>, window_params = [{transform_indices = @transform_0, window_bounds = array<i64: 1, 4, 1, 256>}, {transform_indices = @transform_1, window_bounds = array<i64: 1, 1, 256>}, {transform_indices = @transform_2, window_bounds = array<i64: 1, 1, 256>}]} {
    %c0 = arith.constant 0 : index
    %c0_0 = arith.constant 0 : index
    %c0_1 = arith.constant 0 : index
    %c0_2 = arith.constant 0 : index
    %0 = vector.load %arg2[%c0, %c0_0, %c0_1, %c0_2] : memref<1x4x1x256xf32, #tpu.memory_space<vmem>>, vector<1x4x1x256xf32>
    %1 = vector.shape_cast %0 : vector<1x4x1x256xf32> to vector<4x1x256xf32>
    %c0_3 = arith.constant 0 : index
    %c0_4 = arith.constant 0 : index
    %c0_5 = arith.constant 0 : index
    %2 = vector.load %arg3[%c0_3, %c0_4, %c0_5] : memref<1x1x256xi32, #tpu.memory_space<vmem>>, vector<1x1x256xi32>
    %3 = vector.shape_cast %2 : vector<1x1x256xi32> to vector<1x256xi32>
    %cst = arith.constant dense<0xFF800000> : vector<1x256xf32>
    %4 = vector.multi_reduction <maximumf>, %1, %cst [0] : vector<4x1x256xf32> to vector<1x256xf32>
    %5 = vector.shape_cast %4 : vector<1x256xf32> to vector<1x1x256xf32>
    %6 = vector.broadcast %5 : vector<1x1x256xf32> to vector<4x1x256xf32>
    %7 = arith.subf %1, %6 : vector<4x1x256xf32>
    %8 = math.exp %7 : vector<4x1x256xf32>
    %cst_6 = arith.constant dense<0.000000e+00> : vector<1x256xf32>
    %9 = vector.multi_reduction <add>, %8, %cst_6 [0] : vector<4x1x256xf32> to vector<1x256xf32>
    %10 = tpu.iota {dimensions = array<i32: 0>} : vector<4x1x256xi32>
    %11 = vector.shape_cast %3 : vector<1x256xi32> to vector<1x1x256xi32>
    %12 = vector.broadcast %11 : vector<1x1x256xi32> to vector<4x1x256xi32>
    %13 = arith.cmpi eq, %10, %12 : vector<4x1x256xi32>
    %cst_7 = arith.constant 0.000000e+00 : f32
    %14 = vector.broadcast %cst_7 : f32 to vector<4x1x256xf32>
    %15 = arith.select %13, %7, %14 : vector<4x1x256xi1>, vector<4x1x256xf32>
    %cst_8 = arith.constant dense<0.000000e+00> : vector<1x256xf32>
    %16 = vector.multi_reduction <add>, %15, %cst_8 [0] : vector<4x1x256xf32> to vector<1x256xf32>
    %17 = math.log %9 : vector<1x256xf32>
    %18 = arith.subf %17, %16 : vector<1x256xf32>
    %c0_i32 = arith.constant 0 : i32
    %19 = vector.broadcast %c0_i32 : i32 to vector<1x256xi32>
    %20 = arith.cmpi sge, %3, %19 : vector<1x256xi32>
    %c4_i32 = arith.constant 4 : i32
    %21 = vector.broadcast %c4_i32 : i32 to vector<1x256xi32>
    %22 = arith.cmpi slt, %3, %21 : vector<1x256xi32>
    %23 = arith.andi %20, %22 : vector<1x256xi1>
    %cst_9 = arith.constant 0.000000e+00 : f32
    %24 = vector.broadcast %cst_9 : f32 to vector<1x256xf32>
    %25 = arith.select %23, %18, %24 : vector<1x256xi1>, vector<1x256xf32>
    %c0_10 = arith.constant 0 : index
    %c0_11 = arith.constant 0 : index
    %c0_12 = arith.constant 0 : index
    %26 = vector.load %arg4[%c0_10, %c0_11, %c0_12] : memref<1x1x256xf32, #tpu.memory_space<vmem>>, vector<1x1x256xf32>
    %27 = vector.shape_cast %26 : vector<1x1x256xf32> to vector<1x256xf32>
    %28 = vector.shape_cast %25 : vector<1x256xf32> to vector<1x1x256xf32>
    tpu.vector_store %arg4[%c0_10, %c0_11, %c0_12], %28 {strides = array<i32>} : memref<1x1x256xf32, #tpu.memory_space<vmem>>, vector<1x1x256xf32>,
    return
  }
  func.func @transform_0(%arg0: i32, %arg1: i32) -> (i32, i32, i32, i32) {
    %c0_i32 = arith.constant 0 : i32
    %c0_i32_0 = arith.constant 0 : i32
    %c0_i32_1 = arith.constant 0 : i32
    return %arg0, %c0_i32, %arg1, %c0_i32_0 : i32, i32, i32, i32
  }
  func.func @transform_1(%arg0: i32, %arg1: i32) -> (i32, i32, i32) {
    %c0_i32 = arith.constant 0 : i32
    %c0_i32_0 = arith.constant 0 : i32
    return %arg0, %arg1, %c0_i32 : i32, i32, i32
  }
  func.func @transform_2(%arg0: i32, %arg1: i32) -> (i32, i32, i32) {
    %c0_i32 = arith.constant 0 : i32
    %c0_i32_0 = arith.constant 0 : i32
    return %arg0, %arg1, %c0_i32 : i32, i32, i32
  }
}

</mosaic_0001>

<bundles_post_ra>
// kernel: tpu_custom_call.1
= control target key start
LH: loop header
LB: loop body
LE: loop exit
PB: predicated region body
PF: predicated region fallthrough
CT: control target
= control target key end

     0   :  { %7 = vsyncpa [#allocation3], 0  ;;  %s1015_s0 = inlined_call_operand.hbm [shape: f32[2,4,1,256], index: 0, kind: input, shape index: {}]   ;;  %s1016_s1 = inlined_call_operand.hbm [shape: s32[2,1,256], index: 1, kind: input, shape index: {}]   ;;  %s1017_s2 = inlined_call_operand.hbm [shape: f32[2,1,256], index: 2, kind: output, shape index: {}]  }
   0x1   :  { %9 = vsyncpa [#allocation3 + $0x1], 0 }
   0x2   :  { %10 = vsyncpa [#allocation6], 0 }
   0x3   :  { %12 = vsyncpa [#allocation6 + $0x1], 0 }
   0x4   :  { %13 = vsyncpa [#allocation4], 0 }
   0x5   :  { %15 = vsyncpa [#allocation4 + $0x1], 0  ;;  %s798_s9 = smov 0   ;;  %s800_s10 = smov 0  }
   0x6   :  { %s802_s11 = smov 0   ;;  %s804_s12 = smov 0  }
   0x7   :  { %s806_s13 = smov 0   ;;  %s808_s14 = smov 0  }
   0x8 LB: > { %s531_s15 = sadd.s32 4294967295, %s775_s14   ;;  %s532_s16 = sadd.s32 4294967294, %s775_s14   ;;  %s775_s14 = sphi %s808_s14, %s21_s14   ;;  %s771_s13 = sphi %s806_s13, %s1031_s13   ;;  %s767_s12 = sphi %s804_s12, %s1030_s12   ;;  %s763_s11 = sphi %s802_s11, %s1029_s11   ;;  %s759_s10 = sphi %s800_s10, %s1028_s10   ;;  %s755_s9 = sphi %s798_s9, %s1027_s9  }
   0x9   : > { %s33_s17 = sadd.s32 1, %s771_s13  ;;  %s42_s18 = sadd.s32 1, %s763_s11 }
   0xa   : > { %p35_p0 = scmp.ge.s32.totalorder %s33_s17, 2  ;;  %p49_p1 = scmp.ne.s32.totalorder %s763_s11, %s759_s10 }
   0xb   : > { %p50_p2 = scmp.eq.s32.totalorder %s775_s14, 0  ;;  %p55_p3 = scmp.ne.s32.totalorder %s759_s10, %s755_s9 }
   0xc   : > { %s1033_s17 = smov (%p35_p0, %s33_s17), 0  ;;  %p56_p5 = scmp.eq.s32.totalorder %s531_s15, 0 }
   0xd   : > { %p839_p4 = por %p50_p2, %p49_p1  ;;  %s37_s20 = ssub.s32 %s771_s13, %s1033_s17 }
   0xe   : > { %p109_p6 = scmp.eq.s32.totalorder %s531_s15, 1  ;;  %p40_p7 = scmp.eq.s32.totalorder %s37_s20, 0 }
   0xf   : > { %p845_p8 = por %p56_p5, %p55_p3  ;;  %p115_p10 = scmp.eq.s32.totalorder %s532_s16, 1 }
  0x10   : > { %p849_p9 = por %p109_p6, %p49_p1  ;;  %p570_p13 = scmp.lt.s32.totalorder %s775_s14, 2 }
  0x11   : > { %s854_s23 = scalar_select %p40_p7, %s763_s11, %s42_s18  }
  0x12   : > { %p856_p11 = por %p115_p10, %p55_p3  ;;  %s863_s25 = sand.u32 1, %s763_s11  }
  0x13   : > { %s535_s26 = sshll.u32 %s863_s25, 3  ;;  %s550_s27 = sshll.u32 %s771_s13, 7 }
  0x14   : > { %s147_s30 = scalar_lea.hbm %s1015_s0, %s550_s27  ;;  %s139_s3 = scalar_lea.vmem [#allocation2], %s535_s26 }
  0x15   : > { %s148_s4 = sshll.u32 %s139_s3, 4  ;;  %p872_p0 = pnand %p570_p13, %p839_p4  ;;  %s149_s4 = int_to_ptr.vmem [resolvable:$true] %s148_s4 }
  0x16   : > { %p541_p1 = scmp.ge.s32.totalorder %s775_s14, 1  ;;  %s136_s6 = scalar_lea.sflag [#allocation3], %s863_s25 }
  0x17   : > { %p637_p2 = pneg %p872_p0  ;;  %s648_s7 = scalar_lea.vmem %s149_s4, 128 }
  0x18   : > { %p649_p3 = scmp.ne.s32.totalorder %s149_s4, %s648_s7  ;;  %s777_s8 = smov [#allocation2]  }
  0x19   : > { %s653_s15 = sshll.u32 %s777_s8, 4  ;;  %s654_s15 = int_to_ptr.vmem [resolvable:$false] %s653_s15 }
  0x1a   : > { %p651_p5 = pnand %p649_p3, %p637_p2  ;;  %s655_s16 = scalar_lea.vmem %s654_s15, 256 }
  0x1b   : > { %p656_p4 = scmp.lt.s32.totalorder %s149_s4, %s654_s15  ;;  %p657_p7 = scmp.lt.s32.totalorder %s655_s16, %s648_s7 }
  0x1c   : > { %p652_p6 = pneg %p651_p5 }
  0x1d   : > { %p658_p10 = por %p657_p7, %p656_p4 }
  0x1f   : > { %p659_p13 = pnand %p658_p10, %p652_p6 }
  0x21   : > { %662 = shalt.err (!%p659_p13)
}
  0x22   : > { %s778_s18 = smov 32   ;;  %s779_s19 = smov 2  }
  0x23   : > { %562 = dma.hbm_to_vmem [thread:$0]  (!%p872_p0), %s147_s30, 128, %s149_s4, %s136_s6, %s778_s18, %s778_s18, %s779_s19  }
  0x24   : > { %p177_p3 = scmp.lt.s32.totalorder %s775_s14, 3  ;;  %s538_s20 = sshll.u32 %s863_s25, 1 }
  0x25   : > { %s551_s26 = sshll.u32 %s771_s13, 5  ;;  %s162_s7 = scalar_lea.vmem [#allocation5], %s538_s20 }
  0x26   : > { %p890_p5 = pnand %p541_p1, %p177_p3  ;;  %s170_s3 = scalar_lea.hbm %s1016_s1, %s551_s26 }
  0x27   : > { %s172_s8 = sshll.u32 %s162_s7, 4  ;;  %s159_s15 = scalar_lea.sflag [#allocation6], %s863_s25  ;;  %s173_s8 = int_to_ptr.vmem [resolvable:$true] %s172_s8 }
  0x28   : > { %s676_s16 = scalar_lea.vmem %s173_s8, 32  ;;  %s780_s30 = smov [#allocation5]  }
  0x29   : > { %p677_p6 = scmp.ne.s32.totalorder %s173_s8, %s676_s16  ;;  %s681_s4 = sshll.u32 %s780_s30, 4  ;;  %s682_s4 = int_to_ptr.vmem [resolvable:$false] %s681_s4 }
  0x2a   : > { %s683_s6 = scalar_lea.vmem %s682_s4, 64  ;;  %p684_p1 = scmp.lt.s32.totalorder %s173_s8, %s682_s4 }
  0x2b   : > { %p679_p4 = pnand %p677_p6, %p637_p2  ;;  %p685_p10 = scmp.lt.s32.totalorder %s683_s6, %s676_s16 }
  0x2d   : > { %p680_p7 = pneg %p679_p4  ;;  %p686_p13 = por %p685_p10, %p684_p1 }
  0x2f   : > { %p687_p3 = pnand %p686_p13, %p680_p7 }
  0x31   : > { %690 = shalt.err (!%p687_p3)
}
  0x32   : > { %565 = dma.hbm_to_vmem [thread:$0]  (!%p872_p0), %s170_s3, 32, %s173_s8, %s159_s15  }
  0x33   : > { %181 = sbr.rel (%p890_p5) target bundleno = 135 (0x87), region = 28  ;;  %s906_s25 = sand.u32 (!%p890_p5), 1, %s759_s10  }
  0x34   : > { %s542_s18 = sshll.u32 (!%p890_p5), %s906_s25, 3  ;;  %s184_s19 = scalar_lea.sflag (!%p890_p5), [#allocation3], %s906_s25 }
  0x35   : > { %s187_s20 = scalar_lea.vmem (!%p890_p5), [#allocation2], %s542_s18 }
  0x38   : > { %742 = dma.done.wait (%p845_p8), %s184_s19, 128  }
  0x39   : > { %744 = vsyncadd (%p845_p8), %s184_s19, 4294967168  ;;  %s543_s5 = sshll.u32 %s906_s25, 1  ;;  %s193_s26 = scalar_lea.sflag [#allocation6], %s906_s25 }
  0x3a   : > { %s196_s27 = scalar_lea.vmem [#allocation5], %s543_s5 }
  0x3b   : > { %746 = dma.done.wait (%p845_p8), %s193_s26, 32  }
  0x3c   : > { %748 = vsyncadd (%p845_p8), %s193_s26, 4294967264  ;;  %v227_v0 = vlaneseq  ;;  %v222_v2 = vld [vmem:[%s187_s20] sm:$0x3]  ;;  %v223_v3 = vld [vmem:[%s187_s20 + $0x2] sm:$0x3]  ;;  %vm294_vm3 = vcmask 1040384  }
  0x3d   : > { %v224_v4 = vld [vmem:[%s187_s20 + $0x4] sm:$0x3]  ;;  %v225_v5 = vld [vmem:[%s187_s20 + $0x6] sm:$0x3]  ;;  %v936_v22 = vld [vmem:[%s196_s27] sm:$0x3] }
  0x3e   : > { %vm922_vm0 = vcmp.lt.s32.totalorder %v227_v0, 256  ;;  %v934_v21 = vshrl.u32 %v227_v0, 7  ;;  %vm309_vm1 = vcmp.eq.s32.totalorder %v936_v22, 0  ;;  %vm310_vm2 = vcmp.eq.s32.totalorder %v936_v22, 1  ;;  %s221_s21 = scalar_lea.vmem [#allocation7], %s543_s5  ;;  %s552_s29 = sshll.u32 %s767_s12, 5 }
  0x3f   : > { %v231_v6 = vsel %vm922_vm0, %v222_v2, -inf  ;;  %v232_v7 = vsel %vm922_vm0, %v223_v3, -inf  ;;  %v233_v8 = vsel %vm922_vm0, %v224_v4, -inf  ;;  %v234_v9 = vsel %vm922_vm0, %v225_v5, -inf  ;;  %s421_s28 = sshll.u32 %s221_s21, 4  ;;  %s419_s8 = scalar_lea.hbm %s1017_s2, %s552_s29  ;;  %s968_s28 = int_to_ptr.vmem [resolvable:$true] %s421_s28 }
  0x40   : > { %v235_v10 = vmax.f32 %v231_v6, %v232_v7  ;;  %v236_v11 = vmax.f32 %v233_v8, %v234_v9  ;;  %v256_v23 = vsub.s32 0, %v934_v21  ;;  %v260_v24 = vsub.s32 1, %v934_v21  ;;  %s405_s15 = scalar_lea.sflag [#allocation4], %s906_s25  ;;  %s691_s16 = scalar_lea.vmem %s968_s28, 32 }
  0x41   : > { %vm311_vm4 = vcmp.eq.s32.totalorder %v936_v22, 2  ;;  %vm312_vm5 = vcmp.eq.s32.totalorder %v936_v22, 3  ;;  %vm381_vm6 = vcmp.ge.s32.totalorder %v936_v22, 0  ;;  %vm382_vm7 = vcmp.lt.s32.totalorder %v936_v22, 4  ;;  %p692_p8 = scmp.ne.s32.totalorder %s968_s28, %s691_s16  ;;  %s782_s12 = smov [#allocation7]  }
  0x42   : > { %v237_v12 = vmax.f32 %v235_v10, %v236_v11  ;;  %v781_v11 = vmov 1966171168   ;;  %vm383_vm8 = vmand %vm381_vm6, %vm382_vm7  ;;  %s695_s30 = sshll.u32 %s782_s12, 4  ;;  %s696_s30 = int_to_ptr.vmem [resolvable:$false] %s695_s30 }
  0x43   : > { %p693_p0 = pnand %p692_p8, %p849_p9  ;;  %s697_s4 = scalar_lea.vmem %s696_s30, 64 }
  0x44   : > { %v238_v13 = vsub.f32 %v222_v2, %v237_v12  ;;  %v239_v14 = vsub.f32 %v223_v3, %v237_v12  ;;  %v240_v15 = vsub.f32 %v224_v4, %v237_v12  ;;  %v241_v16 = vsub.f32 %v225_v5, %v237_v12  ;;  %p698_p5 = scmp.lt.s32.totalorder %s968_s28, %s696_s30  ;;  %p699_p6 = scmp.lt.s32.totalorder %s697_s4, %s691_s16 }
  0x45   : > { %v388_v12 = vunpack.c.l.s4 %v781_v11  ;;  %p694_p2 = pneg %p693_p0 }
  0x46   : > { %v242_v17 = vmul.f32 1.442695, %v238_v13  ;;  %v244_v18 = vmul.f32 1.442695, %v239_v14  ;;  %v246_v19 = vmul.f32 1.442695, %v240_v15  ;;  %p700_p4 = por %p699_p6, %p698_p5 }
  0x47   : > { %v248_v20 = vmul.f32 1.442695, %v241_v16  ;;  %v313_v32 = vsel %vm309_vm1, %v238_v13, 0.0  ;;  %v314_v33 = vsel %vm310_vm2, %v239_v14, 0.0  ;;  %v315_v51 = vsel %vm311_vm4, %v240_v15, 0.0 }
  0x48   : > { %623 = vpow2.f32 %v242_v17  ;;  %v324_v52 = vrot.slane %v313_v32, %v256_v23  ;;  %v332_v53 = vrot.slane %v314_v33, %v256_v23  ;;  %v328_v56 = vrot.slane %v313_v32, %v260_v24  ;;  %p701_p7 = pnand %p700_p4, %p694_p2 }
  0x49   : > { %625 = vpow2.f32 %v244_v18  ;;  %v336_v57 = vrot.slane %v314_v33, %v260_v24  ;;  %v340_v58 = vrot.slane %v315_v51, %v256_v23  ;;  %v316_v61 = vsel %vm312_vm5, %v241_v16, 0.0 }
  0x4a   : > { %627 = vpow2.f32 %v246_v19  ;;  %v361_v59 = vsel %vm294_vm3, %v324_v52, 0.0  ;;  %v362_v60 = vsel %vm294_vm3, %v332_v53, 0.0  ;;  %v344_v62 = vrot.slane %v315_v51, %v260_v24 }
  0x4b   : > { %629 = vpow2.f32 %v248_v20  ;;  %v368_v63 = vsel %vm294_vm3, %v328_v56, 0.0  ;;  %v369_v0 = vsel %vm294_vm3, %v336_v57, 0.0  ;;  %v363_v2 = vadd.f32 %v362_v60, %v361_v59 }
  0x4c   : > { %v348_v3 = vrot.slane %v316_v61, %v256_v23  ;;  %v364_v4 = vsel %vm294_vm3, %v340_v58, 0.0  ;;  %v370_v5 = vadd.f32 %v369_v0, %v368_v63  ;;  %v352_v6 = vrot.slane %v316_v61, %v260_v24 }
  0x4d   : > { %v371_v7 = vsel %vm294_vm3, %v344_v62, 0.0  ;;  %v365_v8 = vadd.f32 %v364_v4, %v363_v2  ;;  %v389_v17 = vunpack.c.0.s8 %v388_v12 }
  0x4e   : > { %v366_v9 = vsel %vm294_vm3, %v348_v3, 0.0  ;;  %v372_v10 = vadd.f32 %v371_v7, %v370_v5  ;;  %v373_v13 = vsel %vm294_vm3, %v352_v6, 0.0 }
  0x4f   : > { %v367_v14 = vadd.f32 %v366_v9, %v365_v8 }
  0x50   : > { %v374_v16 = vadd.f32 %v373_v13, %v372_v10 }
  0x55   : > { %v624_v25 = vpop.eup %623 }
  0x56   : > { %v626_v26 = vpop.eup %625  ;;  %v257_v27 = vrot.slane %v624_v25, %v256_v23  ;;  %v261_v28 = vrot.slane %v624_v25, %v260_v24  ;;  %v392_v25 = vsub.s32 %v389_v17, %v934_v21 }
  0x57   : > { %v628_v29 = vpop.eup %627  ;;  %v265_v30 = vrot.slane %v626_v26, %v256_v23  ;;  %v269_v31 = vrot.slane %v626_v26, %v260_v24 }
  0x58   : > { %v630_v34 = vpop.eup %629  ;;  %v273_v35 = vrot.slane %v628_v29, %v256_v23  ;;  %v277_v36 = vrot.slane %v628_v29, %v260_v24  ;;  %v295_v37 = vsel %vm294_vm3, %v257_v27, 0.0  ;;  %v302_v38 = vsel %vm294_vm3, %v261_v28, 0.0 }
  0x59   : > { %v281_v39 = vrot.slane %v630_v34, %v256_v23  ;;  %v285_v40 = vrot.slane %v630_v34, %v260_v24  ;;  %v296_v41 = vsel %vm294_vm3, %v265_v30, 0.0  ;;  %v303_v42 = vsel %vm294_vm3, %v269_v31, 0.0 }
  0x5a   : > { %v297_v43 = vadd.f32 %v296_v41, %v295_v37  ;;  %v298_v44 = vsel %vm294_vm3, %v273_v35, 0.0  ;;  %v304_v45 = vadd.f32 %v303_v42, %v302_v38  ;;  %v305_v46 = vsel %vm294_vm3, %v277_v36, 0.0 }
  0x5b   : > { %v300_v47 = vsel %vm294_vm3, %v281_v39, 0.0  ;;  %v307_v48 = vsel %vm294_vm3, %v285_v40, 0.0 }
  0x5c   : > { %v299_v49 = vadd.f32 %v298_v44, %v297_v43  ;;  %v306_v50 = vadd.f32 %v305_v46, %v304_v45 }
  0x5e   : > { %v301_v54 = vadd.f32 %v300_v47, %v299_v49  ;;  %v308_v55 = vadd.f32 %v307_v48, %v306_v50 }
  0x60   : > { %631 = vlog2.f32 %v301_v54 }
  0x61   : > { %633 = vlog2.f32 %v308_v55 }
  0x6d   : > { %v632_v15 = vpop.eup %631 }
  0x6e   : > { %v634_v18 = vpop.eup %633  ;;  %v376_v19 = vmul.f32 0.6931472, %v632_v15 }
  0x6f   : > { %v378_v20 = vmul.f32 0.6931472, %v634_v18 }
  0x70   : > { %v379_v23 = vsub.f32 %v376_v19, %v367_v14 }
  0x71   : > { %v380_v24 = vsub.f32 %v378_v20, %v374_v16 }
  0x73   : > { %v386_v26 = vcombine.low %v379_v23, %v380_v24 }
  0x75   : > { %v393_v27 = vrot.slane %v386_v26, %v392_v25 }
  0x77   : > { %v400_v28 = vrot.slane %v393_v27, %v392_v25 }
  0x79   : > { %v402_v21 = vsel %vm383_vm8, %v400_v28, 0.0 }
  0x7a   : > { %403 = vst.msk [vmem:[%s221_s21] sm:$0x3] %vm922_vm0, %v402_v21 }
  0x7b   : > { %704 = shalt.err (!%p701_p7)
}
  0x7c   : > { %s705_s6 = scalar_lea.hbm %s419_s8, 32  ;;  %s709_s19 = scalar_lea.hbm %s1017_s2, 64 }
  0x7d   : > { %p706_p1 = scmp.ne.s32.totalorder %s419_s8, %s705_s6  ;;  %p710_p3 = scmp.lt.s32.totalorder %s419_s8, %s1017_s2 }
  0x7e   : > { %p711_p8 = scmp.lt.s32.totalorder %s709_s19, %s705_s6 }
  0x7f   : > { %p707_p10 = pnand %p706_p1, %p849_p9 }
  0x80   : > { %p712_p0 = por %p711_p8, %p710_p3 }
  0x81   : > { %p708_p13 = pneg %p707_p10 }
  0x83   : > { %p713_p12 = pnand %p712_p0, %p708_p13 }
  0x85   : > { %716 = shalt.err (!%p713_p12)
}
  0x86   : > { %557 = dma.vmem_to_hbm [thread:$0]  (%p849_p9), %s968_s28, 32, %s419_s8, %s405_s15  }
  0x87 PF: > { %s433_s26 = sand.u32 1, %s755_s9   ;;  %p1026_p2 = scmp.ge.s32.totalorder %s775_s14, 2 }
  0x88   : > { %s434_s27 = scalar_lea.sflag [#allocation4], %s433_s26 }
  0x89   : > { %p567_p5 = pnand %p1026_p2, %p856_p11 }
  0x8b   : > { %p568_p6 = pneg %p567_p5 }
  0x8d   : > { %750 = dma.done.wait (%p568_p6), %s434_s27, 32  }
  0x8e   : > { %752 = vsyncadd (%p568_p6), %s434_s27, 4294967264  ;;  %s21_s14 = sadd.s32 1, %s775_s14   ;;  %s1027_s9 = smov %s759_s10 }
  0x8f   : > { %p18_p4 = scmp.ge.s32.totalorder %s21_s14, 4   ;;  %s1028_s10 = smov %s763_s11 }
  0x90   : > { %s1029_s11 = smov %s854_s23  ;;  %s1030_s12 = smov %s771_s13 }
  0x91   : > { %s1031_s13 = smov %s1033_s17  ;;  %20 = sbr.rel (!%p18_p4) target bundleno = 8 (0x8), region = 86 }
  0x96   :  { %439 = vsyncpa [#allocation3], 1 }
  0x97   :  { %441 = vsyncpa [#allocation3 + $0x1], 1 }
  0x98   :  { %442 = vsyncpa [#allocation6], 1 }
  0x99   :  { %444 = vsyncpa [#allocation6 + $0x1], 1 }
  0x9a   :  { %445 = vsyncpa [#allocation4], 1 }
  0x9b   :  { %447 = vsyncpa [#allocation4 + $0x1], 1 }

</bundles_post_ra>
